<compile_context>
chip_gen: v5e
topology: v5e:2x2
jax: 0.10.0
libtpu: 0.0.40
codegen_flags: <defaults>
</compile_context>

<pallas_src>
import jax
import jax.numpy as jnp
from jax.experimental import pallas as pl
from jax.experimental.pallas import tpu as pltpu


def graph_encoder_kernel(x_ref, adj_ref,
                         wg_ref, bg_ref, g0_ref, be0_ref,
                         w1_ref, b1_ref, g1_ref, be1_ref,
                         wh_ref, bh_ref,
                         out_ref):
    """One grid step = one graph; everything resident in VMEM.

    Matmul operands may be bf16 (MXU fast path); accumulation, BatchNorm
    statistics, softplus and all bias/affine math stay fp32 (VPU/EUP).
    """
    eps = jnp.float32(1e-5)
    mm_dtype = wg_ref.dtype  # bf16 on the fast path, fp32 on the reference path

    # --- GCNLayer: (x @ Wg + bg), then adj @ (.)  (torch.sparse.mm done densely) ---
    h = jnp.dot(x_ref[...], wg_ref[...], preferred_element_type=jnp.float32)
    h = h + bg_ref[...]                              # bias added BEFORE adj mm, as in the module
    h = jnp.dot(adj_ref[...], h.astype(mm_dtype), preferred_element_type=jnp.float32)

    # --- BatchNorm1d(graph_dim): training-mode batch stats, one-pass variance ---
    mean0 = jnp.mean(h, axis=0, keepdims=True)
    var0 = jnp.maximum(jnp.mean(h * h, axis=0, keepdims=True) - mean0 * mean0, 0.0)
    h = (h - mean0) * jax.lax.rsqrt(var0 + eps) * g0_ref[...] + be0_ref[...]
    h0 = jax.nn.softplus(h)

    # --- fc1 + BatchNorm1d(hidden_dim) + softplus  (idx is None path) ---
    h1 = jnp.dot(h0.astype(mm_dtype), w1_ref[...],
                 preferred_element_type=jnp.float32) + b1_ref[...]
    mean1 = jnp.mean(h1, axis=0, keepdims=True)
    var1 = jnp.maximum(jnp.mean(h1 * h1, axis=0, keepdims=True) - mean1 * mean1, 0.0)
    h1 = (h1 - mean1) * jax.lax.rsqrt(var1 + eps) * g1_ref[...] + be1_ref[...]
    h1 = jax.nn.softplus(h1)

    # --- fused heads: [fc21 | fc22] as a single matmul + single lane-dense store ---
    out_ref[...] = (jnp.dot(h1.astype(mm_dtype), wh_ref[...],
                            preferred_element_type=jnp.float32)
                    + bh_ref[...]).astype(out_ref.dtype)


def graph_encoder_forward(x, adj, params, *, use_bf16=True):
    """x: [N, D_in] or [B, N, D_in]; adj: [N, N] or [B, N, N] (dense, stands in
    for the torch.sparse adjacency). Returns (mu, logvar) of shape [..., N, latent]."""
    single = (x.ndim == 2)
    if single:
        x, adj = x[None], adj[None]

    B, N, input_dim = x.shape
    graph_dim = params["wg"].shape[1]
    hidden_dim = params["w1"].shape[1]
    latent_dim = params["w21"].shape[1]

    mm_dtype = jnp.bfloat16 if use_bf16 else jnp.float32
    xq = x.astype(mm_dtype)
    adjq = adj.astype(mm_dtype)
    wg = params["wg"].astype(mm_dtype)
    w1 = params["w1"].astype(mm_dtype)
    # Fused heads: one [hidden, 2*latent] weight / bias, one output slab.
    wh = jnp.concatenate([params["w21"], params["w22"]], axis=1).astype(mm_dtype)
    bh = jnp.concatenate([params["b21"], params["b22"]], axis=1).astype(jnp.float32)

    inputs = (
        xq, adjq,
        wg, params["bg"], params["gamma0"], params["beta0"],
        w1, params["b1"], params["gamma1"], params["beta1"],
        wh, bh,
    )

    def per_graph(n, d):
        # One graph per grid step; the batch dim is squeezed away inside the kernel.
        return pl.BlockSpec((None, n, d), lambda b: (b, 0, 0))

    def resident(arr):
        # Whole array, constant block index -> DMA'd once, VMEM-resident across steps.
        return pl.BlockSpec(arr.shape, lambda b: (0, 0))

    in_specs = [
        per_graph(N, input_dim), per_graph(N, N),
        resident(wg), resident(params["bg"]),
        resident(params["gamma0"]), resident(params["beta0"]),
        resident(w1), resident(params["b1"]),
        resident(params["gamma1"]), resident(params["beta1"]),
        resident(wh), resident(bh),
    ]
    out_spec = pl.BlockSpec((None, N, 2 * latent_dim), lambda b: (b, 0, 0))

    flops = 2 * B * N * (input_dim * graph_dim + N * graph_dim
                         + graph_dim * hidden_dim + hidden_dim * 2 * latent_dim)
    transcendentals = 2 * B * N * (graph_dim + hidden_dim)          # softplus exp/log
    out_bytes = B * N * 2 * latent_dim * 4
    bytes_accessed = int(sum(int(a.size) * a.dtype.itemsize for a in inputs)) + out_bytes

    out = pl.pallas_call(
        graph_encoder_kernel,
        out_shape=jax.ShapeDtypeStruct((B, N, 2 * latent_dim), jnp.float32),
        grid_spec=pltpu.PrefetchScalarGridSpec(
            num_scalar_prefetch=0,
            grid=(B,),
            in_specs=in_specs,
            out_specs=out_spec,
        ),
        compiler_params=pltpu.CompilerParams(
            dimension_semantics=("parallel",),      # v7x: split the batch across 2 TCs
            vmem_limit_bytes=32 * 1024 * 1024,      # explicit scoped-VMEM budget
        ),
        cost_estimate=pl.CostEstimate(
            flops=flops,
            transcendentals=transcendentals,
            bytes_accessed=bytes_accessed,
        ),
    )(*inputs)

    mu, logvar = out[..., :latent_dim], out[..., latent_dim:]
    if single:
        mu, logvar = mu[0], logvar[0]
    return mu, logvar


def graph_encoder_reference(x, adj, params):
    """Pure-JAX fp32 reference of the PyTorch forward (idx=None)."""
    eps = 1e-5
    h = x @ params["wg"] + params["bg"]
    h = adj @ h
    m0 = h.mean(0, keepdims=True)
    v0 = ((h - m0) ** 2).mean(0, keepdims=True)
    h0 = jax.nn.softplus((h - m0) / jnp.sqrt(v0 + eps) * params["gamma0"] + params["beta0"])
    h1 = h0 @ params["w1"] + params["b1"]
    m1 = h1.mean(0, keepdims=True)
    v1 = ((h1 - m1) ** 2).mean(0, keepdims=True)
    h1 = jax.nn.softplus((h1 - m1) / jnp.sqrt(v1 + eps) * params["gamma1"] + params["beta1"])
    return h1 @ params["w21"] + params["b21"], h1 @ params["w22"] + params["b22"]


def init_params(key, input_dim, hidden_dim, graph_dim, latent_dim):
    """Deterministic parameter init (shapes match the PyTorch module)."""
    ks = jax.random.split(key, 8)

    def xavier(k, fan_in, fan_out):
        bound = jnp.sqrt(6.0 / (fan_in + fan_out))
        return jax.random.uniform(k, (fan_in, fan_out), jnp.float32, -bound, bound)

    def linear(kw, kb, fan_in, fan_out):
        bound = 1.0 / jnp.sqrt(fan_in)
        w = jax.random.uniform(kw, (fan_in, fan_out), jnp.float32, -bound, bound)
        b = jax.random.uniform(kb, (1, fan_out), jnp.float32, -bound, bound)
        return w, b

    wg = xavier(ks[0], input_dim, graph_dim)
    bg = jnp.zeros((1, graph_dim), jnp.float32)              # GCN bias init zeros
    w1, b1 = linear(ks[1], ks[2], graph_dim, hidden_dim)
    w21, b21 = linear(ks[3], ks[4], hidden_dim, latent_dim)
    w22, b22 = linear(ks[5], ks[6], hidden_dim, latent_dim)
    return dict(
        wg=wg, bg=bg,
        gamma0=jnp.ones((1, graph_dim), jnp.float32),
        beta0=jnp.zeros((1, graph_dim), jnp.float32),
        w1=w1, b1=b1,
        gamma1=jnp.ones((1, hidden_dim), jnp.float32),
        beta1=jnp.zeros((1, hidden_dim), jnp.float32),
        w21=w21, b21=b21, w22=w22, b22=b22,
    )


if __name__ == "__main__":
    # Small shapes consistent with the module's forward semantics.
    B, N = 4, 8
    INPUT_DIM, HIDDEN_DIM, GRAPH_DIM, LATENT_DIM = 32, 32, 16, 8

    key = jax.random.PRNGKey(0)
    kx, kadj, kp = jax.random.split(key, 3)

    x = jax.random.normal(kx, (B, N, INPUT_DIM), jnp.float32)

    # Dense, row-normalized adjacency standing in for torch.sparse adj.
    a = (jax.random.uniform(kadj, (B, N, N)) > 0.6).astype(jnp.float32)
    a = a + jnp.eye(N, dtype=jnp.float32)[None]
    adj = a / jnp.sum(a, axis=-1, keepdims=True)

    params = init_params(kp, INPUT_DIM, HIDDEN_DIM, GRAPH_DIM, LATENT_DIM)

    # Pure-JAX fp32 reference for numerical sanity.
    ref_mu, ref_logvar = jax.vmap(
        lambda xb, ab: graph_encoder_reference(xb, ab, params))(x, adj)

    # fp32 kernel path (reference-precision check).
    mu32, logvar32 = graph_encoder_forward(x, adj, params, use_bf16=False)
    jax.block_until_ready((mu32, logvar32))
    assert mu32.shape == (B, N, LATENT_DIM) and logvar32.shape == (B, N, LATENT_DIM)
    assert bool(jnp.allclose(mu32, ref_mu, atol=5e-2, rtol=5e-2))
    assert bool(jnp.allclose(logvar32, ref_logvar, atol=5e-2, rtol=5e-2))

    # bf16-operand fast path (v5e/v6e/v7x MXU), fp32 accumulation / BN / softplus.
    mu, logvar = graph_encoder_forward(x, adj, params, use_bf16=True)
    jax.block_until_ready((mu, logvar))
    assert mu.shape == (B, N, LATENT_DIM) and logvar.shape == (B, N, LATENT_DIM)
    assert bool(jnp.all(jnp.isfinite(mu))) and bool(jnp.all(jnp.isfinite(logvar)))
    assert float(jnp.max(jnp.abs(mu - ref_mu))) < 0.25
    assert float(jnp.max(jnp.abs(logvar - ref_logvar))) < 0.25

    # Single-graph API, same signature as the PyTorch module's forward.
    mu1, logvar1 = graph_encoder_forward(x[0], adj[0], params, use_bf16=True)
    jax.block_until_ready((mu1, logvar1))
    assert mu1.shape == (N, LATENT_DIM) and logvar1.shape == (N, LATENT_DIM)

    print("KERNEL_OK")
</pallas_src>

<mosaic_0001>
module attributes {stable_mosaic.version = 11 : i64} {
  func.func @graph_encoder_kernel(%arg0: i32, %arg1: memref<1x8x32xf32, #tpu.memory_space<vmem>>, %arg2: memref<1x8x8xf32, #tpu.memory_space<vmem>>, %arg3: memref<32x16xf32, #tpu.memory_space<vmem>>, %arg4: memref<1x16xf32, #tpu.memory_space<vmem>>, %arg5: memref<1x16xf32, #tpu.memory_space<vmem>>, %arg6: memref<1x16xf32, #tpu.memory_space<vmem>>, %arg7: memref<16x32xf32, #tpu.memory_space<vmem>>, %arg8: memref<1x32xf32, #tpu.memory_space<vmem>>, %arg9: memref<1x32xf32, #tpu.memory_space<vmem>>, %arg10: memref<1x32xf32, #tpu.memory_space<vmem>>, %arg11: memref<32x16xf32, #tpu.memory_space<vmem>>, %arg12: memref<1x16xf32, #tpu.memory_space<vmem>>, %arg13: memref<1x8x16xf32, #tpu.memory_space<vmem>>) attributes {dimension_semantics = [#tpu.dimension_semantics<parallel>], iteration_bounds = array<i64: 4>, scalar_prefetch = 0 : i64, scratch_operands = 0 : i64, tpu.core_type = #tpu.core_type<tc>, window_params = [{transform_indices = @transform_0, window_bounds = array<i64: 1, 8, 32>}, {transform_indices = @transform_1, window_bounds = array<i64: 1, 8, 8>}, {pipeline_mode = #tpu.pipeline_mode<synchronous>, transform_indices = @transform_2, window_bounds = array<i64: 32, 16>}, {pipeline_mode = #tpu.pipeline_mode<synchronous>, transform_indices = @transform_3, window_bounds = array<i64: 1, 16>}, {pipeline_mode = #tpu.pipeline_mode<synchronous>, transform_indices = @transform_4, window_bounds = array<i64: 1, 16>}, {pipeline_mode = #tpu.pipeline_mode<synchronous>, transform_indices = @transform_5, window_bounds = array<i64: 1, 16>}, {pipeline_mode = #tpu.pipeline_mode<synchronous>, transform_indices = @transform_6, window_bounds = array<i64: 16, 32>}, {pipeline_mode = #tpu.pipeline_mode<synchronous>, transform_indices = @transform_7, window_bounds = array<i64: 1, 32>}, {pipeline_mode = #tpu.pipeline_mode<synchronous>, transform_indices = @transform_8, window_bounds = array<i64: 1, 32>}, {pipeline_mode = #tpu.pipeline_mode<synchronous>, transform_indices = @transform_9, window_bounds = array<i64: 1, 32>}, {pipeline_mode = #tpu.pipeline_mode<synchronous>, transform_indices = @transform_10, window_bounds = array<i64: 32, 16>}, {pipeline_mode = #tpu.pipeline_mode<synchronous>, transform_indices = @transform_11, window_bounds = array<i64: 1, 16>}, {transform_indices = @transform_12, window_bounds = array<i64: 1, 8, 16>}]} {
    %c0 = arith.constant 0 : index
    %c0_0 = arith.constant 0 : index
    %c0_1 = arith.constant 0 : index
    %0 = vector.load %arg1[%c0, %c0_0, %c0_1] : memref<1x8x32xf32, #tpu.memory_space<vmem>>, vector<1x8x32xf32>
    %1 = vector.shape_cast %0 : vector<1x8x32xf32> to vector<8x32xf32>
    %c0_2 = arith.constant 0 : index
    %c0_3 = arith.constant 0 : index
    %2 = vector.load %arg3[%c0_2, %c0_3] : memref<32x16xf32, #tpu.memory_space<vmem>>, vector<32x16xf32>
    %cst = arith.constant dense<0.000000e+00> : vector<8x16xf32>
    %3 = tpu.matmul %1, %2, %cst {dimension_numbers = #tpu.dot_dimension_numbers<[1], [0], [0], [1], [0, 0, 1, 1], [], []>} : vector<8x32xf32>, vector<32x16xf32>, vector<8x16xf32> -> vector<8x16xf32>
    %c0_4 = arith.constant 0 : index
    %c0_5 = arith.constant 0 : index
    %4 = vector.load %arg4[%c0_4, %c0_5] : memref<1x16xf32, #tpu.memory_space<vmem>>, vector<1x16xf32>
    %5 = vector.broadcast %4 : vector<1x16xf32> to vector<8x16xf32>
    %6 = arith.addf %3, %5 : vector<8x16xf32>
    %c0_6 = arith.constant 0 : index
    %c0_7 = arith.constant 0 : index
    %c0_8 = arith.constant 0 : index
    %7 = vector.load %arg2[%c0_6, %c0_7, %c0_8] : memref<1x8x8xf32, #tpu.memory_space<vmem>>, vector<1x8x8xf32>
    %8 = vector.shape_cast %7 : vector<1x8x8xf32> to vector<8x8xf32>
    %cst_9 = arith.constant dense<0.000000e+00> : vector<8x16xf32>
    %9 = tpu.matmul %8, %6, %cst_9 {dimension_numbers = #tpu.dot_dimension_numbers<[1], [0], [0], [1], [0, 0, 1, 1], [], []>} : vector<8x8xf32>, vector<8x16xf32>, vector<8x16xf32> -> vector<8x16xf32>
    %cst_10 = arith.constant dense<0.000000e+00> : vector<16xf32>
    %10 = vector.multi_reduction <add>, %9, %cst_10 [0] : vector<8x16xf32> to vector<16xf32>
    %11 = vector.shape_cast %10 : vector<16xf32> to vector<1x16xf32>
    %cst_11 = arith.constant 8.000000e+00 : f32
    %12 = vector.broadcast %cst_11 : f32 to vector<1x16xf32>
    %13 = arith.divf %11, %12 : vector<1x16xf32>
    %14 = arith.mulf %9, %9 : vector<8x16xf32>
    %cst_12 = arith.constant dense<0.000000e+00> : vector<16xf32>
    %15 = vector.multi_reduction <add>, %14, %cst_12 [0] : vector<8x16xf32> to vector<16xf32>
    %16 = vector.shape_cast %15 : vector<16xf32> to vector<1x16xf32>
    %cst_13 = arith.constant 8.000000e+00 : f32
    %17 = vector.broadcast %cst_13 : f32 to vector<1x16xf32>
    %18 = arith.divf %16, %17 : vector<1x16xf32>
    %19 = arith.mulf %13, %13 : vector<1x16xf32>
    %20 = arith.subf %18, %19 : vector<1x16xf32>
    %cst_14 = arith.constant 0.000000e+00 : f32
    %21 = vector.broadcast %cst_14 : f32 to vector<1x16xf32>
    %22 = arith.maximumf %20, %21 : vector<1x16xf32>
    %23 = vector.broadcast %13 : vector<1x16xf32> to vector<8x16xf32>
    %24 = arith.subf %9, %23 : vector<8x16xf32>
    %cst_15 = arith.constant 9.99999974E-6 : f32
    %25 = vector.broadcast %cst_15 : f32 to vector<1x16xf32>
    %26 = arith.addf %22, %25 : vector<1x16xf32>
    %27 = math.rsqrt %26 : vector<1x16xf32>
    %28 = vector.broadcast %27 : vector<1x16xf32> to vector<8x16xf32>
    %29 = arith.mulf %24, %28 : vector<8x16xf32>
    %c0_16 = arith.constant 0 : index
    %c0_17 = arith.constant 0 : index
    %30 = vector.load %arg5[%c0_16, %c0_17] : memref<1x16xf32, #tpu.memory_space<vmem>>, vector<1x16xf32>
    %31 = vector.broadcast %30 : vector<1x16xf32> to vector<8x16xf32>
    %32 = arith.mulf %29, %31 : vector<8x16xf32>
    %c0_18 = arith.constant 0 : index
    %c0_19 = arith.constant 0 : index
    %33 = vector.load %arg6[%c0_18, %c0_19] : memref<1x16xf32, #tpu.memory_space<vmem>>, vector<1x16xf32>
    %34 = vector.broadcast %33 : vector<1x16xf32> to vector<8x16xf32>
    %35 = arith.addf %32, %34 : vector<8x16xf32>
    %cst_20 = arith.constant 0.000000e+00 : f32
    %36 = vector.broadcast %cst_20 : f32 to vector<8x16xf32>
    %37 = arith.maximumf %35, %36 : vector<8x16xf32>
    %38 = vector.broadcast %cst_20 : f32 to vector<8x16xf32>
    %39 = arith.subf %35, %38 : vector<8x16xf32>
    %40 = arith.cmpf one, %39, %39 : vector<8x16xf32>
    %41 = vector.broadcast %cst_20 : f32 to vector<8x16xf32>
    %42 = arith.addf %35, %41 : vector<8x16xf32>
    %43 = math.absf %39 : vector<8x16xf32>
    %cst_21 = arith.constant 0.000000e+00 : f32
    %44 = vector.broadcast %cst_21 : f32 to vector<8x16xf32>
    %45 = arith.subf %44, %43 : vector<8x16xf32>
    %46 = math.exp %45 : vector<8x16xf32>
    %47 = math.log1p %46 : vector<8x16xf32>
    %48 = arith.addf %37, %47 : vector<8x16xf32>
    %49 = arith.select %40, %42, %48 : vector<8x16xi1>, vector<8x16xf32>
    %c0_22 = arith.constant 0 : index
    %c0_23 = arith.constant 0 : index
    %50 = vector.load %arg7[%c0_22, %c0_23] : memref<16x32xf32, #tpu.memory_space<vmem>>, vector<16x32xf32>
    %cst_24 = arith.constant dense<0.000000e+00> : vector<8x32xf32>
    %51 = tpu.matmul %49, %50, %cst_24 {dimension_numbers = #tpu.dot_dimension_numbers<[1], [0], [0], [1], [0, 0, 1, 1], [], []>} : vector<8x16xf32>, vector<16x32xf32>, vector<8x32xf32> -> vector<8x32xf32>
    %c0_25 = arith.constant 0 : index
    %c0_26 = arith.constant 0 : index
    %52 = vector.load %arg8[%c0_25, %c0_26] : memref<1x32xf32, #tpu.memory_space<vmem>>, vector<1x32xf32>
    %53 = vector.broadcast %52 : vector<1x32xf32> to vector<8x32xf32>
    %54 = arith.addf %51, %53 : vector<8x32xf32>
    %cst_27 = arith.constant dense<0.000000e+00> : vector<32xf32>
    %55 = vector.multi_reduction <add>, %54, %cst_27 [0] : vector<8x32xf32> to vector<32xf32>
    %56 = vector.shape_cast %55 : vector<32xf32> to vector<1x32xf32>
    %cst_28 = arith.constant 8.000000e+00 : f32
    %57 = vector.broadcast %cst_28 : f32 to vector<1x32xf32>
    %58 = arith.divf %56, %57 : vector<1x32xf32>
    %59 = arith.mulf %54, %54 : vector<8x32xf32>
    %cst_29 = arith.constant dense<0.000000e+00> : vector<32xf32>
    %60 = vector.multi_reduction <add>, %59, %cst_29 [0] : vector<8x32xf32> to vector<32xf32>
    %61 = vector.shape_cast %60 : vector<32xf32> to vector<1x32xf32>
    %cst_30 = arith.constant 8.000000e+00 : f32
    %62 = vector.broadcast %cst_30 : f32 to vector<1x32xf32>
    %63 = arith.divf %61, %62 : vector<1x32xf32>
    %64 = arith.mulf %58, %58 : vector<1x32xf32>
    %65 = arith.subf %63, %64 : vector<1x32xf32>
    %cst_31 = arith.constant 0.000000e+00 : f32
    %66 = vector.broadcast %cst_31 : f32 to vector<1x32xf32>
    %67 = arith.maximumf %65, %66 : vector<1x32xf32>
    %68 = vector.broadcast %58 : vector<1x32xf32> to vector<8x32xf32>
    %69 = arith.subf %54, %68 : vector<8x32xf32>
    %cst_32 = arith.constant 9.99999974E-6 : f32
    %70 = vector.broadcast %cst_32 : f32 to vector<1x32xf32>
    %71 = arith.addf %67, %70 : vector<1x32xf32>
    %72 = math.rsqrt %71 : vector<1x32xf32>
    %73 = vector.broadcast %72 : vector<1x32xf32> to vector<8x32xf32>
    %74 = arith.mulf %69, %73 : vector<8x32xf32>
    %c0_33 = arith.constant 0 : index
    %c0_34 = arith.constant 0 : index
    %75 = vector.load %arg9[%c0_33, %c0_34] : memref<1x32xf32, #tpu.memory_space<vmem>>, vector<1x32xf32>
    %76 = vector.broadcast %75 : vector<1x32xf32> to vector<8x32xf32>
    %77 = arith.mulf %74, %76 : vector<8x32xf32>
    %c0_35 = arith.constant 0 : index
    %c0_36 = arith.constant 0 : index
    %78 = vector.load %arg10[%c0_35, %c0_36] : memref<1x32xf32, #tpu.memory_space<vmem>>, vector<1x32xf32>
    %79 = vector.broadcast %78 : vector<1x32xf32> to vector<8x32xf32>
    %80 = arith.addf %77, %79 : vector<8x32xf32>
    %cst_37 = arith.constant 0.000000e+00 : f32
    %81 = vector.broadcast %cst_37 : f32 to vector<8x32xf32>
    %82 = arith.maximumf %80, %81 : vector<8x32xf32>
    %83 = vector.broadcast %cst_37 : f32 to vector<8x32xf32>
    %84 = arith.subf %80, %83 : vector<8x32xf32>
    %85 = arith.cmpf one, %84, %84 : vector<8x32xf32>
    %86 = vector.broadcast %cst_37 : f32 to vector<8x32xf32>
    %87 = arith.addf %80, %86 : vector<8x32xf32>
    %88 = math.absf %84 : vector<8x32xf32>
    %cst_38 = arith.constant 0.000000e+00 : f32
    %89 = vector.broadcast %cst_38 : f32 to vector<8x32xf32>
    %90 = arith.subf %89, %88 : vector<8x32xf32>
    %91 = math.exp %90 : vector<8x32xf32>
    %92 = math.log1p %91 : vector<8x32xf32>
    %93 = arith.addf %82, %92 : vector<8x32xf32>
    %94 = arith.select %85, %87, %93 : vector<8x32xi1>, vector<8x32xf32>
    %c0_39 = arith.constant 0 : index
    %c0_40 = arith.constant 0 : index
    %95 = vector.load %arg11[%c0_39, %c0_40] : memref<32x16xf32, #tpu.memory_space<vmem>>, vector<32x16xf32>
    %cst_41 = arith.constant dense<0.000000e+00> : vector<8x16xf32>
    %96 = tpu.matmul %94, %95, %cst_41 {dimension_numbers = #tpu.dot_dimension_numbers<[1], [0], [0], [1], [0, 0, 1, 1], [], []>} : vector<8x32xf32>, vector<32x16xf32>, vector<8x16xf32> -> vector<8x16xf32>
    %c0_42 = arith.constant 0 : index
    %c0_43 = arith.constant 0 : index
    %97 = vector.load %arg12[%c0_42, %c0_43] : memref<1x16xf32, #tpu.memory_space<vmem>>, vector<1x16xf32>
    %98 = vector.broadcast %97 : vector<1x16xf32> to vector<8x16xf32>
    %99 = arith.addf %96, %98 : vector<8x16xf32>
    %c0_44 = arith.constant 0 : index
    %c0_45 = arith.constant 0 : index
    %c0_46 = arith.constant 0 : index
    %100 = vector.load %arg13[%c0_44, %c0_45, %c0_46] : memref<1x8x16xf32, #tpu.memory_space<vmem>>, vector<1x8x16xf32>
    %101 = vector.shape_cast %100 : vector<1x8x16xf32> to vector<8x16xf32>
    %102 = vector.shape_cast %99 : vector<8x16xf32> to vector<1x8x16xf32>
    tpu.vector_store %arg13[%c0_44, %c0_45, %c0_46], %102 {strides = array<i32>} : memref<1x8x16xf32, #tpu.memory_space<vmem>>, vector<1x8x16xf32>,
    return
  }
  func.func @transform_0(%arg0: i32) -> (i32, i32, i32) {
    %c0_i32 = arith.constant 0 : i32
    %c0_i32_0 = arith.constant 0 : i32
    %c0_i32_1 = arith.constant 0 : i32
    return %arg0, %c0_i32, %c0_i32_0 : i32, i32, i32
  }
  func.func @transform_1(%arg0: i32) -> (i32, i32, i32) {
    %c0_i32 = arith.constant 0 : i32
    %c0_i32_0 = arith.constant 0 : i32
    %c0_i32_1 = arith.constant 0 : i32
    return %arg0, %c0_i32, %c0_i32_0 : i32, i32, i32
  }
  func.func @transform_2(%arg0: i32) -> (i32, i32) {
    %c0_i32 = arith.constant 0 : i32
    %c0_i32_0 = arith.constant 0 : i32
    %c0_i32_1 = arith.constant 0 : i32
    return %c0_i32, %c0_i32_0 : i32, i32
  }
  func.func @transform_3(%arg0: i32) -> (i32, i32) {
    %c0_i32 = arith.constant 0 : i32
    %c0_i32_0 = arith.constant 0 : i32
    %c0_i32_1 = arith.constant 0 : i32
    return %c0_i32, %c0_i32_0 : i32, i32
  }
  func.func @transform_4(%arg0: i32) -> (i32, i32) {
    %c0_i32 = arith.constant 0 : i32
    %c0_i32_0 = arith.constant 0 : i32
    %c0_i32_1 = arith.constant 0 : i32
    return %c0_i32, %c0_i32_0 : i32, i32
  }
  func.func @transform_5(%arg0: i32) -> (i32, i32) {
    %c0_i32 = arith.constant 0 : i32
    %c0_i32_0 = arith.constant 0 : i32
    %c0_i32_1 = arith.constant 0 : i32
    return %c0_i32, %c0_i32_0 : i32, i32
  }
  func.func @transform_6(%arg0: i32) -> (i32, i32) {
    %c0_i32 = arith.constant 0 : i32
    %c0_i32_0 = arith.constant 0 : i32
    %c0_i32_1 = arith.constant 0 : i32
    return %c0_i32, %c0_i32_0 : i32, i32
  }
  func.func @transform_7(%arg0: i32) -> (i32, i32) {
    %c0_i32 = arith.constant 0 : i32
    %c0_i32_0 = arith.constant 0 : i32
    %c0_i32_1 = arith.constant 0 : i32
    return %c0_i32, %c0_i32_0 : i32, i32
  }
  func.func @transform_8(%arg0: i32) -> (i32, i32) {
    %c0_i32 = arith.constant 0 : i32
    %c0_i32_0 = arith.constant 0 : i32
    %c0_i32_1 = arith.constant 0 : i32
    return %c0_i32, %c0_i32_0 : i32, i32
  }
  func.func @transform_9(%arg0: i32) -> (i32, i32) {
    %c0_i32 = arith.constant 0 : i32
    %c0_i32_0 = arith.constant 0 : i32
    %c0_i32_1 = arith.constant 0 : i32
    return %c0_i32, %c0_i32_0 : i32, i32
  }
  func.func @transform_10(%arg0: i32) -> (i32, i32) {
    %c0_i32 = arith.constant 0 : i32
    %c0_i32_0 = arith.constant 0 : i32
    %c0_i32_1 = arith.constant 0 : i32
    return %c0_i32, %c0_i32_0 : i32, i32
  }
  func.func @transform_11(%arg0: i32) -> (i32, i32) {
    %c0_i32 = arith.constant 0 : i32
    %c0_i32_0 = arith.constant 0 : i32
    %c0_i32_1 = arith.constant 0 : i32
    return %c0_i32, %c0_i32_0 : i32, i32
  }
  func.func @transform_12(%arg0: i32) -> (i32, i32, i32) {
    %c0_i32 = arith.constant 0 : i32
    %c0_i32_0 = arith.constant 0 : i32
    %c0_i32_1 = arith.constant 0 : i32
    return %arg0, %c0_i32, %c0_i32_0 : i32, i32, i32
  }
}

</mosaic_0001>

<bundles_post_ra>
// kernel: tpu_custom_call.1
= control target key start
LH: loop header
LB: loop body
LE: loop exit
PB: predicated region body
PF: predicated region fallthrough
CT: control target
= control target key end

     0   :  { %s1121_s0 = inlined_call_operand.vmem [shape: f32[4,8,32], index: 0, kind: input, shape index: {}]   ;;  %s1122_s1 = inlined_call_operand.vmem [shape: f32[4,8,8], index: 1, kind: input, shape index: {}]   ;;  %s1123_s2 = inlined_call_operand.vmem [shape: f32[32,16], index: 2, kind: input, shape index: {}]   ;;  %s1124_s3 = inlined_call_operand.vmem [shape: f32[1,16], index: 3, kind: input, shape index: {}]   ;;  %s1125_s4 = inlined_call_operand.vmem [shape: f32[1,16], index: 4, kind: input, shape index: {}]   ;;  %s1126_s5 = inlined_call_operand.vmem [shape: f32[1,16], index: 5, kind: input, shape index: {}]   ;;  %s1127_s6 = inlined_call_operand.vmem [shape: f32[16,32], index: 6, kind: input, shape index: {}]   ;;  %s1128_s7 = inlined_call_operand.vmem [shape: f32[1,32], index: 7, kind: input, shape index: {}]   ;;  %s1129_s8 = inlined_call_operand.vmem [shape: f32[1,32], index: 8, kind: input, shape index: {}]   ;;  %s1130_s9 = inlined_call_operand.vmem [shape: f32[1,32], index: 9, kind: input, shape index: {}]   ;;  %s1131_s10 = inlined_call_operand.vmem [shape: f32[32,16], index: 10, kind: input, shape index: {}]   ;;  %s1132_s11 = inlined_call_operand.vmem [shape: f32[1,16], index: 11, kind: input, shape index: {}]   ;;  %s1133_s12 = inlined_call_operand.hbm [shape: f32[4,8,16], index: 12, kind: output, shape index: {}]  }
   0x1   :  { %1135 = sst [smem:[#allocation7_spill]] %s1121_s0 }
   0x2   :  { %1136 = sst [smem:[#allocation8_spill]] %s1122_s1 }
   0x3   :  { %17 = vsyncpa [#allocation3], 0 }
   0x4   :  { %19 = vsyncpa [#allocation3 + $0x1], 0  ;;  %s968_s21 = smov 0   ;;  %s970_s22 = smov 0  }
   0x5   :  { %s972_s23 = smov 0   ;;  %s974_s24 = smov 0  }
   0x6 LB: > { %1137 = sst [smem:[#allocation5_spill]] %s896_s23  ;;  %s989_s25 = sadd.s32 4294967295, %s900_s24   ;;  %s900_s24 = sphi %s974_s24, %s1147_s24   ;;  %s896_s23 = sphi %s972_s23, %s1144_s23   ;;  %s892_s22 = sphi %s970_s22, %s1146_s22   ;;  %s888_s21 = sphi %s968_s21, %s1145_s21  }
   0x7   : > { %s762_s26 = sadd.s32 4294967294, %s900_s24   ;;  %s993_s27 = sadd.s32 1, %s900_s24  }
   0x8   : > { %s294_s28 = sadd.s32 1, %s896_s23  ;;  %s291_s29 = ssub.s32 %s900_s24, %s993_s27 }
   0x9   : > { %p304_p0 = scmp.ne.s32.totalorder %s896_s23, %s892_s22  ;;  %p292_p1 = scmp.eq.s32.totalorder %s291_s29, 0 }
   0xa   : > { %p305_p2 = scmp.eq.s32.totalorder %s989_s25, 3  ;;  %p310_p3 = scmp.ne.s32.totalorder %s892_s22, %s888_s21 }
   0xb   : > { %p311_p4 = scmp.eq.s32.totalorder %s762_s26, 3  ;;  %p765_p7 = scmp.ge.s32.totalorder %s900_s24, 1 }
   0xc   : > { %s1004_s30 = scalar_select %p292_p1, %s896_s23, %s294_s28  }
   0xd   : > { %p1006_p5 = por %p305_p2, %p304_p0  ;;  %p1010_p6 = por %p311_p4, %p310_p3 }
   0xe   : > { %1138 = sst [smem:[#allocation6_spill]] %s1004_s30  ;;  %p373_p8 = scmp.lt.s32.totalorder %s900_s24, 5 }
  0x10   : > { %p374_p9 = pnand %p765_p7, %p373_p8 }
  0x11   : > { %p418_p10 = scmp.lt.s32.totalorder (!%p374_p9), %s989_s25, 3  ;;  %s1141_s0 = sld [smem:[#allocation7_spill]] (!%p374_p9) }
  0x12   : > { %377 = sbr.rel (%p374_p9) target bundleno = 707 (0x2c3), region = 68  ;;  %s1142_s1 = sld [smem:[#allocation8_spill]] (!%p374_p9) }
  0x17   : > { %v430_v0 = vld [vmem:[%s1123_s2 + $0x18] sm:$0xff]  ;;  %v429_v1 = vld [vmem:[%s1123_s2 + $0x10] sm:$0xff]  ;;  %v428_v2 = vld [vmem:[%s1123_s2 + $0x8] sm:$0xff]  ;;  %s419_s26 = scalar_select %p418_p10, %s989_s25, 3  ;;  %vm435_vm0 = vcmask 261120   ;;  %vm460_vm1 = vcmask 64512  }
  0x18   : > { %451 = vmatpush.msra.mxu0 %v430_v0  ;;  %v427_v3 = vld [vmem:[%s1123_s2] sm:$0xff]  ;;  %v902_v9 = vmov 8.0   ;;  %vm484_vm2 = vcmask 130048   ;;  %v554_v38 = vld [vmem:[%s1127_s6 + $0x8] sm:$0xff] }
  0x19   : > { %s767_s15 = sshll.u32 %s419_s26, 3  ;;  %v817_v5 = vld [vmem:[%s1124_s3] ss:$0 sm:$0xff]  ;;  %824 = vrcp.f32 %v902_v9  ;;  %576 = vmatpush.msra.mxu2 %v554_v38  ;;  %s774_s26 = sshll.u32 %s989_s25, 3 }
  0x1a   : > { %452 = vmatpush.msra.mxu0 %v429_v1  ;;  %s421_s23 = scalar_lea.vmem %s1141_s0, %s767_s15  ;;  %s425_s28 = scalar_lea.vmem %s1142_s1, %s767_s15  ;;  %v553_v39 = vld [vmem:[%s1127_s6] sm:$0xff] }
  0x1b   : > { %v426_v4 = vld [vmem:[%s421_s23] sm:$0xff]  ;;  %577 = vmatpush.msra.mxu2 %v553_v39  ;;  %s415_s23 = sand.u32 1, %s892_s22   ;;  %s686_s16 = scalar_lea.hbm %s1133_s12, %s774_s26 }
  0x1c   : > { %453 = vmatpush.msra.mxu0 %v428_v2  ;;  %v459_v8 = vld [vmem:[%s425_s28] sm:$0xff]  ;;  %s766_s30 = sshll.u32 %s415_s23, 3  ;;  %s690_s28 = sshll.u32 %s686_s16, 4  ;;  %s691_s28 = int_to_ptr.hbm [resolvable:$true] %s690_s28 }
  0x1d   : > { %v818_v47 = vld [vmem:[%s1125_s4] ss:$0 sm:$0xff]  ;;  %s417_s19 = scalar_lea.vmem [#allocation2], %s766_s30  ;;  %s676_s0 = scalar_lea.sflag [#allocation3], %s415_s23 }
  0x1e   : > { %454 = vmatpush.msra.mxu0 %v427_v3  ;;  %v819_v50 = vld [vmem:[%s1126_s5] ss:$0 sm:$0xff]  ;;  %s688_s20 = sshll.u32 %s417_s19, 4  ;;  %s852_s25 = sshra.s32 %s691_s28, 4  ;;  %s689_s20 = int_to_ptr.vmem [resolvable:$true] %s688_s20  ;;  %s853_s25 = int_to_ptr.hbm [resolvable:$true] %s852_s25 }
  0x1f   : > { %769 = vmatmul.msk.f32.vlgmr.msra.gmra.mxu0 %vm435_vm0, %v426_v4  ;;  %v825_v10 = vpop.eup %824  ;;  %v820_v4 = vld [vmem:[%s1128_s7] ss:$0 sm:$0xff]  ;;  %s854_s1 = scalar_lea.hbm %s853_s25, 8  ;;  %s858_s30 = scalar_lea.hbm %s1133_s12, 32 }
  0x20   : > { %v493_v11 = vmul.f32 8.0, %v825_v10  ;;  %vm497_vm3 = vweird.f32 %v825_v10  ;;  %v821_v39 = vld [vmem:[%s1129_s8] ss:$0 sm:$0xff]  ;;  %p855_p11 = scmp.ne.s32.totalorder %s853_s25, %s854_s1  ;;  %p859_p0 = scmp.lt.s32.totalorder %s853_s25, %s1133_s12 }
  0x21   : > { %p860_p1 = scmp.lt.s32.totalorder %s858_s30, %s854_s1 }
  0x22   : > { %v494_v12 = vsub.f32 1.0, %v493_v11  ;;  %p856_p12 = pnand %p855_p11, %p1006_p5 }
  0x23   : > { %p861_p2 = por %p860_p1, %p859_p0 }
  0x24   : > { %v495_v17 = vmul.f32 %v825_v10, %v494_v12  ;;  %p857_p13 = pneg %p856_p12 }
  0x26   : > { %v496_v23 = vadd.f32 %v825_v10, %v495_v17  ;;  %p862_p3 = pnand %p861_p2, %p857_p13 }
  0x28   : > { %v1042_v28 = vsel %vm497_vm3, %v825_v10, %v496_v23 }
  0x9c   : > { %v456_v6 = vpop.f32.mrf.mxu0 }
  0x9d   : > { %v457_v7 = vadd.f32 %v817_v5, %v456_v6 }
  0x9f   : > { %479 = vmatpush.msra.mxu1 %v457_v7 }
  0xa0   : > { %770 = vmatmul.msk.f32.vlgmr.msra.gmra.mxu1 %vm460_vm1, %v459_v8 }
 0x11d   : > { %v481_v13 = vpop.f32.mrf.mxu1 }
 0x11e   : > { %v485_v14 = vsel %vm484_vm2, %v481_v13, 0.0  ;;  %v500_v15 = vmul.f32 %v481_v13, %v481_v13 }
 0x11f   : > { %v486_v16 = vrot.slane %v485_v14, 4 }
 0x120   : > { %v501_v18 = vsel %vm484_vm2, %v500_v15, 0.0 }
 0x121   : > { %v487_v19 = vadd.f32 %v486_v16, %v485_v14  ;;  %v502_v20 = vrot.slane %v501_v18, 4 }
 0x123   : > { %v488_v21 = vrot.slane %v487_v19, 2  ;;  %v503_v22 = vadd.f32 %v502_v20, %v501_v18 }
 0x125   : > { %v489_v24 = vadd.f32 %v488_v21, %v487_v19  ;;  %v504_v25 = vrot.slane %v503_v22, 2  ;;  %v646_v21 = vld [vmem:[%s1131_s10 + $0x18] sm:$0xff] }
 0x126   : > { %666 = vmatpush.msra.mxu3 %v646_v21 }
 0x127   : > { %v490_v26 = vrot.slane %v489_v24, 1  ;;  %v505_v27 = vadd.f32 %v504_v25, %v503_v22  ;;  %v645_v22 = vld [vmem:[%s1131_s10 + $0x10] sm:$0xff]  ;;  %v644_v25 = vld [vmem:[%s1131_s10 + $0x8] sm:$0xff] }
 0x128   : > { %667 = vmatpush.msra.mxu3 %v645_v22 }
 0x129   : > { %v491_v29 = vadd.f32 %v490_v26, %v489_v24  ;;  %v506_v30 = vrot.slane %v505_v27, 1 }
 0x12a   : > { %668 = vmatpush.msra.mxu3 %v644_v25 }
 0x12b   : > { %v499_v31 = vmul.f32 %v1042_v28, %v491_v29  ;;  %v507_v32 = vadd.f32 %v506_v30, %v505_v27  ;;  %v643_v29 = vld [vmem:[%s1131_s10] sm:$0xff] }
 0x12c   : > { %669 = vmatpush.msra.mxu3 %v643_v29 }
 0x12d   : > { %v508_v33 = vmul.f32 %v507_v32, %v1042_v28  ;;  %v509_v34 = vmul.f32 %v499_v31, %v499_v31  ;;  %v512_v46 = vsub.f32 %v481_v13, %v499_v31 }
 0x12f   : > { %v510_v35 = vsub.f32 %v508_v33, %v509_v34 }
 0x131   : > { %v511_v36 = vmax.f32 %v510_v35, 0.0 }
 0x133   : > { %v513_v37 = vadd.f32 1e-05, %v511_v36 }
 0x135   : > { %826 = vrsqrt.f32 %v513_v37  ;;  %vm520_vm5 = vweird.f32 %v513_v37 }
 0x13b   : > { %v827_v40 = vpop.eup %826 }
 0x13c   : > { %v515_v41 = vmul.f32 %v827_v40, %v513_v37  ;;  %vm521_vm4 = vweird.f32 %v827_v40 }
 0x13d   : > { %vm522_vm6 = vmor %vm520_vm5, %vm521_vm4 }
 0x13e   : > { %v516_v42 = vmul.f32 %v827_v40, %v515_v41 }
 0x140   : > { %v517_v43 = vmul.f32 0.5, %v516_v42  ;;  %v822_v42 = vld [vmem:[%s1130_s9] ss:$0 sm:$0xff] }
 0x142   : > { %v518_v44 = vsub.f32 1.5, %v517_v43 }
 0x144   : > { %v519_v45 = vmul.f32 %v827_v40, %v518_v44 }
 0x146   : > { %v523_v48 = vsel %vm522_vm6, %v827_v40, %v519_v45 }
 0x147   : > { %v524_v49 = vmul.f32 %v523_v48, %v512_v46 }
 0x149   : > { %v529_v51 = vmul.f32 %v818_v47, %v524_v49 }
 0x14b   : > { %v534_v52 = vadd.f32 %v819_v50, %v529_v51 }
 0x14d   : > { %v538_v53 = vand.u32 2147483647, %v534_v52  ;;  %v535_v0 = vmax.f32 %v534_v52, 0.0  ;;  %vm536_vm8 = vcmp.ne.f32.partialorder %v534_v52, %v534_v52 }
 0x14f   : > { %v539_v54 = vsub.f32 0.0, %v538_v53 }
 0x151   : > { %v540_v55 = vmul.f32 1.442695, %v539_v54 }
 0x153   : > { %828 = vpow2.f32 %v540_v55 }
 0x159   : > { %v829_v56 = vpop.eup %828 }
 0x15a   : > { %v542_v57 = vadd.f32 1.0, %v829_v56  ;;  %v545_v58 = vmul.f32 -0.5, %v829_v56  ;;  %v548_v60 = vand.u32 2147483647, %v829_v56 }
 0x15c   : > { %830 = vlog2.f32 %v542_v57  ;;  %v546_v59 = vadd.f32 1.0, %v545_v58  ;;  %vm549_vm7 = vcmp.lt.f32.partialorder %v548_v60, 0.0004427343  ;;  %v823_v60 = vld [vmem:[%s1132_s11] ss:$0 sm:$0xff] }
 0x15e   : > { %v547_v63 = vmul.f32 %v829_v56, %v546_v59 }
 0x162   : > { %v831_v61 = vpop.eup %830 }
 0x163   : > { %v544_v62 = vmul.f32 0.6931472, %v831_v61 }
 0x165   : > { %v550_v1 = vsel %vm549_vm7, %v547_v63, %v544_v62 }
 0x166   : > { %v551_v2 = vadd.f32 %v550_v1, %v535_v0 }
 0x168   : > { %v552_v3 = vsel %vm536_vm8, %v534_v52, %v551_v2 }
 0x169   : > { %771 = vmatmul.msk.f32.vlgmr.msra.gmra.mxu2 %vm484_vm2, %v552_v3 }
 0x1ec   : > { %v579_v5 = vpop.f32.mrf.mxu2 }
 0x1ed   : > { %v580_v6 = vadd.f32 %v820_v4, %v579_v5 }
 0x1ef   : > { %v582_v7 = vsel %vm435_vm0, %v580_v6, 0.0  ;;  %v590_v8 = vmul.f32 %v580_v6, %v580_v6 }
 0x1f0   : > { %v583_v9 = vrot.slane %v582_v7, 4 }
 0x1f1   : > { %v591_v10 = vsel %vm435_vm0, %v590_v8, 0.0 }
 0x1f2   : > { %v584_v11 = vadd.f32 %v583_v9, %v582_v7  ;;  %v592_v12 = vrot.slane %v591_v10, 4 }
 0x1f4   : > { %v585_v13 = vrot.slane %v584_v11, 2  ;;  %v593_v14 = vadd.f32 %v592_v12, %v591_v10 }
 0x1f6   : > { %v586_v15 = vadd.f32 %v585_v13, %v584_v11  ;;  %v594_v16 = vrot.slane %v593_v14, 2 }
 0x1f8   : > { %v587_v17 = vrot.slane %v586_v15, 1  ;;  %v595_v18 = vadd.f32 %v594_v16, %v593_v14 }
 0x1fa   : > { %v588_v19 = vadd.f32 %v587_v17, %v586_v15  ;;  %v596_v20 = vrot.slane %v595_v18, 1 }
 0x1fc   : > { %v589_v23 = vmul.f32 %v588_v19, %v1042_v28  ;;  %v597_v24 = vadd.f32 %v596_v20, %v595_v18 }
 0x1fe   : > { %v598_v26 = vmul.f32 %v597_v24, %v1042_v28  ;;  %v599_v27 = vmul.f32 %v589_v23, %v589_v23  ;;  %v602_v28 = vsub.f32 %v580_v6, %v589_v23 }
 0x200   : > { %v600_v30 = vsub.f32 %v598_v26, %v599_v27 }
 0x202   : > { %v601_v31 = vmax.f32 %v600_v30, 0.0 }
 0x204   : > { %v603_v32 = vadd.f32 1e-05, %v601_v31 }
 0x206   : > { %832 = vrsqrt.f32 %v603_v32  ;;  %vm610_vm10 = vweird.f32 %v603_v32 }
 0x20c   : > { %v833_v33 = vpop.eup %832 }
 0x20d   : > { %v605_v34 = vmul.f32 %v833_v33, %v603_v32  ;;  %vm611_vm9 = vweird.f32 %v833_v33 }
 0x20e   : > { %vm612_vm11 = vmor %vm610_vm10, %vm611_vm9 }
 0x20f   : > { %v606_v35 = vmul.f32 %v833_v33, %v605_v34 }
 0x211   : > { %v607_v36 = vmul.f32 0.5, %v606_v35 }
 0x213   : > { %v608_v37 = vsub.f32 1.5, %v607_v36 }
 0x215   : > { %v609_v38 = vmul.f32 %v833_v33, %v608_v37 }
 0x217   : > { %v613_v40 = vsel %vm612_vm11, %v833_v33, %v609_v38 }
 0x218   : > { %v614_v41 = vmul.f32 %v613_v40, %v602_v28 }
 0x21a   : > { %v619_v43 = vmul.f32 %v821_v39, %v614_v41 }
 0x21c   : > { %v624_v44 = vadd.f32 %v822_v42, %v619_v43 }
 0x21e   : > { %v628_v45 = vand.u32 2147483647, %v624_v44  ;;  %v625_v56 = vmax.f32 %v624_v44, 0.0  ;;  %vm626_vm13 = vcmp.ne.f32.partialorder %v624_v44, %v624_v44 }
 0x220   : > { %v629_v46 = vsub.f32 0.0, %v628_v45 }
 0x222   : > { %v630_v47 = vmul.f32 1.442695, %v629_v46 }
 0x224   : > { %834 = vpow2.f32 %v630_v47 }
 0x22a   : > { %v835_v48 = vpop.eup %834 }
 0x22b   : > { %v632_v49 = vadd.f32 1.0, %v835_v48  ;;  %v635_v50 = vmul.f32 -0.5, %v835_v48  ;;  %v638_v52 = vand.u32 2147483647, %v835_v48 }
 0x22d   : > { %836 = vlog2.f32 %v632_v49  ;;  %v636_v51 = vadd.f32 1.0, %v635_v50  ;;  %vm639_vm12 = vcmp.lt.f32.partialorder %v638_v52, 0.0004427343 }
 0x22f   : > { %v637_v55 = vmul.f32 %v835_v48, %v636_v51 }
 0x233   : > { %v837_v53 = vpop.eup %836 }
 0x234   : > { %v634_v54 = vmul.f32 0.6931472, %v837_v53 }
 0x236   : > { %v640_v57 = vsel %vm639_vm12, %v637_v55, %v634_v54 }
 0x237   : > { %v641_v58 = vadd.f32 %v640_v57, %v625_v56 }
 0x239   : > { %v642_v59 = vsel %vm626_vm13, %v624_v44, %v641_v58 }
 0x23a   : > { %772 = vmatmul.msk.f32.vlgmr.msra.gmra.mxu3 %vm435_vm0, %v642_v59 }
 0x2bd   : > { %v671_v61 = vpop.f32.mrf.mxu3 }
 0x2be   : > { %v672_v62 = vadd.f32 %v823_v60, %v671_v61 }
 0x2c0   : > { %674 = vst.msk [vmem:[%s417_s19] sm:$0xff] %vm484_vm2, %v672_v62 }
 0x2c1   : > { %865 = shalt.err (!%p862_p3)
}
 0x2c2   : > { %777 = dma.vmem_to_hbm [thread:$0]  (%p1006_p5), %s689_s20, 128, %s691_s28, %s676_s0  }
 0x2c3 PF: > { %p783_p4 = scmp.ge.s32.totalorder %s900_s24, 2  ;;  %s702_s23 = sand.u32 1, %s888_s21  }
 0x2c4   : > { %s703_s17 = scalar_lea.sflag [#allocation3], %s702_s23 }
 0x2c5   : > { %p780_p7 = pnand %p783_p4, %p1010_p6 }
 0x2c7   : > { %p781_p8 = pneg %p780_p7 }
 0x2c9   : > { %883 = dma.done.wait (%p781_p8), %s703_s17, 128  }
 0x2ca   : > { %885 = vsyncadd (%p781_p8), %s703_s17, 4294967168  ;;  %s1143_s1 = sld [smem:[#allocation5_spill]]  ;;  %p22_p9 = scmp.ge.s32.totalorder %s993_s27, 6  }
 0x2cb   : > { %s1144_s23 = sld [smem:[#allocation6_spill]]  ;;  %s1145_s21 = smov %s892_s22 }
 0x2cc   : > { %s1147_s24 = smov %s993_s27  ;;  %24 = sbr.rel (!%p22_p9) target bundleno = 6 (0x6), region = 106 }
 0x2d0   : > { %s1146_s22 = smov %s1143_s1 }
 0x2d1   :  { %709 = vsyncpa [#allocation3], 1 }
 0x2d2   :  { %711 = vsyncpa [#allocation3 + $0x1], 1 }

</bundles_post_ra>
